<compile_context>
chip_gen: v6e
topology: v6e:2x2x1
jax: 0.10.0
libtpu: 0.0.40
codegen_flags: <defaults>
</compile_context>

<pallas_src>
import functools

import jax
import jax.numpy as jnp
from jax.experimental import pallas as pl
from jax.experimental.pallas import tpu as pltpu


def gine_layer_kernel(a_ref, xfull_ref, xrow_ref, w_ref, b_ref, o_ref,
                      *, eps, final):
    """Fused GINE layer for one tile of node rows.

      agg = A_rows @ relu(X_full)          (neighbor sum, MXU)
      z   = (1+eps) * X_rows + agg
      h   = z @ W + b                      (MXU)
      out = relu(h)                 if not final  (dropout == identity in eval)
          = log_softmax(h, axis=1)  if final
    """
    # Neighbor aggregation on the MXU (vmatmul has its own VLIW slot).
    agg = jnp.dot(a_ref[...], jnp.maximum(xfull_ref[...], 0.0),
                  preferred_element_type=jnp.float32)
    z = (1.0 + eps) * xrow_ref[...] + agg
    h = jnp.dot(z, w_ref[...], preferred_element_type=jnp.float32) + b_ref[...]

    if final:
        # Numerically stable log_softmax over classes (last dim).
        m = jnp.max(h, axis=-1, keepdims=True)
        lse = m + jnp.log(jnp.sum(jnp.exp(h - m), axis=-1, keepdims=True))
        out = h - lse
    else:
        out = jnp.maximum(h, 0.0)
    o_ref[...] = out.astype(o_ref.dtype)


def gine_layer(a, x, w, b, *, eps=0.0, final=False, tile_n=None):
    """One GINEConv (+relu or +log_softmax) over all N nodes, tiled by rows."""
    N, F = x.shape
    H = w.shape[1]
    if tile_n is None:
        # Big tiles amortize the ~0.35 us per-grid-step overhead; at these
        # feature widths even tile_n=1024 is far below the VMEM limit on
        # v5e/v6e (128 MiB) and v7x (64 MiB).
        tile_n = min(N, 1024)
    assert N % tile_n == 0 and tile_n % 8 == 0, (N, tile_n)
    grid = (N // tile_n,)

    kernel = functools.partial(gine_layer_kernel, eps=eps, final=final)
    return pl.pallas_call(
        kernel,
        out_shape=jax.ShapeDtypeStruct((N, H), jnp.float32),
        grid_spec=pltpu.PrefetchScalarGridSpec(
            num_scalar_prefetch=0,
            grid=grid,
            in_specs=[
                # Row tile of the adjacency operator (lane axis = N, dense).
                pl.BlockSpec((tile_n, N), lambda i: (i, 0)),
                # Full feature matrix (kept VMEM-resident across row tiles).
                pl.BlockSpec((N, F), lambda i: (0, 0)),
                # Self-feature rows for this tile.
                pl.BlockSpec((tile_n, F), lambda i: (i, 0)),
                # Weights / bias (resident).
                pl.BlockSpec((F, H), lambda i: (0, 0)),
                pl.BlockSpec((1, H), lambda i: (0, 0)),
            ],
            out_specs=pl.BlockSpec((tile_n, H), lambda i: (i, 0)),
        ),
        # No cross-iteration state -> row-tile axis is truly parallel
        # (lets v7x shard the tiles across both TensorCores).
        compiler_params=pltpu.CompilerParams(
            dimension_semantics=("parallel",)),
    )(a, x, x, w, b)


def gine_net_forward(x, edge_index, w1, b1, w2, b2, *, tile_n=None):
    """GINE_NET.forward (eval mode). x: (N, F) f32, edge_index: (2, E) int32."""
    N = x.shape[0]
    src, dst = edge_index[0], edge_index[1]
    # Dense aggregation operator: A[i, j] = #edges j -> i  (sum aggregation).
    # Scatter-add is done in the wrapper (irregular; no rectangular tile form).
    a = jnp.zeros((N, N), jnp.float32).at[dst, src].add(1.0)

    h1 = gine_layer(a, x, w1, b1.reshape(1, -1), eps=0.0, final=False,
                    tile_n=tile_n)
    # TODO(synk): F.dropout is identity in eval mode; training-mode dropout
    # (pltpu.prng_random_bits mask) is intentionally omitted here.
    out = gine_layer(a, h1, w2, b2.reshape(1, -1), eps=0.0, final=True,
                     tile_n=tile_n)
    return out


def _reference(x, edge_index, w1, b1, w2, b2):
    """Pure-JAX reference of the same forward pass."""
    N = x.shape[0]
    src, dst = edge_index[0], edge_index[1]
    a = jnp.zeros((N, N), jnp.float32).at[dst, src].add(1.0)
    agg1 = a @ jax.nn.relu(x)
    h1 = jax.nn.relu((x + agg1) @ w1 + b1)
    agg2 = a @ jax.nn.relu(h1)
    h2 = (h1 + agg2) @ w2 + b2
    return jax.nn.log_softmax(h2, axis=1)


if __name__ == "__main__":
    N_NODES, N_EDGES = 128, 512
    FEAT, HIDDEN, CLASSES = 32, 64, 8

    key = jax.random.PRNGKey(0)
    kx, ke, kw1, kb1, kw2, kb2 = jax.random.split(key, 6)

    x = jax.random.normal(kx, (N_NODES, FEAT), dtype=jnp.float32)
    edge_index = jax.random.randint(ke, (2, N_EDGES), 0, N_NODES,
                                    dtype=jnp.int32)

    # nn.Linear-style init U(-1/sqrt(fan_in), 1/sqrt(fan_in)); weights stored
    # already transposed as (in, out) so the kernel does x @ W.
    bound1 = 1.0 / (FEAT ** 0.5)
    w1 = jax.random.uniform(kw1, (FEAT, HIDDEN), minval=-bound1, maxval=bound1,
                            dtype=jnp.float32)
    b1 = jax.random.uniform(kb1, (HIDDEN,), minval=-bound1, maxval=bound1,
                            dtype=jnp.float32)
    bound2 = 1.0 / (HIDDEN ** 0.5)
    w2 = jax.random.uniform(kw2, (HIDDEN, CLASSES), minval=-bound2,
                            maxval=bound2, dtype=jnp.float32)
    b2 = jax.random.uniform(kb2, (CLASSES,), minval=-bound2, maxval=bound2,
                            dtype=jnp.float32)

    # tile_n=64 -> 2 row tiles, exercising the parallel grid axis.
    out = gine_net_forward(x, edge_index, w1, b1, w2, b2, tile_n=64)
    jax.block_until_ready(out)

    ref = _reference(x, edge_index, w1, b1, w2, b2)
    assert out.shape == (N_NODES, CLASSES)
    assert jnp.allclose(out, ref, atol=5e-2, rtol=5e-2), float(
        jnp.max(jnp.abs(out - ref)))

    print("KERNEL_OK")
</pallas_src>

<mosaic_0001>
module attributes {stable_mosaic.version = 11 : i64} {
  func.func @gine_layer_kernel(%arg0: i32, %arg1: memref<64x128xf32, #tpu.memory_space<vmem>>, %arg2: memref<128x32xf32, #tpu.memory_space<vmem>>, %arg3: memref<64x32xf32, #tpu.memory_space<vmem>>, %arg4: memref<32x64xf32, #tpu.memory_space<vmem>>, %arg5: memref<1x64xf32, #tpu.memory_space<vmem>>, %arg6: memref<64x64xf32, #tpu.memory_space<vmem>>) attributes {dimension_semantics = [#tpu.dimension_semantics<parallel>], iteration_bounds = array<i64: 2>, scalar_prefetch = 0 : i64, scratch_operands = 0 : i64, tpu.core_type = #tpu.core_type<tc>, window_params = [{transform_indices = @transform_0, window_bounds = array<i64: 64, 128>}, {pipeline_mode = #tpu.pipeline_mode<synchronous>, transform_indices = @transform_1, window_bounds = array<i64: 128, 32>}, {transform_indices = @transform_2, window_bounds = array<i64: 64, 32>}, {pipeline_mode = #tpu.pipeline_mode<synchronous>, transform_indices = @transform_3, window_bounds = array<i64: 32, 64>}, {pipeline_mode = #tpu.pipeline_mode<synchronous>, transform_indices = @transform_4, window_bounds = array<i64: 1, 64>}, {transform_indices = @transform_5, window_bounds = array<i64: 64, 64>}]} {
    %c0 = arith.constant 0 : index
    %c0_0 = arith.constant 0 : index
    %0 = vector.load %arg1[%c0, %c0_0] : memref<64x128xf32, #tpu.memory_space<vmem>>, vector<64x128xf32>
    %c0_1 = arith.constant 0 : index
    %c0_2 = arith.constant 0 : index
    %1 = vector.load %arg2[%c0_1, %c0_2] : memref<128x32xf32, #tpu.memory_space<vmem>>, vector<128x32xf32>
    %cst = arith.constant 0.000000e+00 : f32
    %2 = vector.broadcast %cst : f32 to vector<128x32xf32>
    %3 = arith.maximumf %1, %2 : vector<128x32xf32>
    %cst_3 = arith.constant dense<0.000000e+00> : vector<64x32xf32>
    %4 = tpu.matmul %0, %3, %cst_3 {dimension_numbers = #tpu.dot_dimension_numbers<[1], [0], [0], [1], [0, 0, 1, 1], [], []>} : vector<64x128xf32>, vector<128x32xf32>, vector<64x32xf32> -> vector<64x32xf32>
    %c0_4 = arith.constant 0 : index
    %c0_5 = arith.constant 0 : index
    %5 = vector.load %arg3[%c0_4, %c0_5] : memref<64x32xf32, #tpu.memory_space<vmem>>, vector<64x32xf32>
    %cst_6 = arith.constant 1.000000e+00 : f32
    %6 = vector.broadcast %cst_6 : f32 to vector<64x32xf32>
    %7 = arith.mulf %6, %5 : vector<64x32xf32>
    %8 = arith.addf %7, %4 : vector<64x32xf32>
    %c0_7 = arith.constant 0 : index
    %c0_8 = arith.constant 0 : index
    %9 = vector.load %arg4[%c0_7, %c0_8] : memref<32x64xf32, #tpu.memory_space<vmem>>, vector<32x64xf32>
    %cst_9 = arith.constant dense<0.000000e+00> : vector<64x64xf32>
    %10 = tpu.matmul %8, %9, %cst_9 {dimension_numbers = #tpu.dot_dimension_numbers<[1], [0], [0], [1], [0, 0, 1, 1], [], []>} : vector<64x32xf32>, vector<32x64xf32>, vector<64x64xf32> -> vector<64x64xf32>
    %c0_10 = arith.constant 0 : index
    %c0_11 = arith.constant 0 : index
    %11 = vector.load %arg5[%c0_10, %c0_11] : memref<1x64xf32, #tpu.memory_space<vmem>>, vector<1x64xf32>
    %12 = vector.broadcast %11 : vector<1x64xf32> to vector<64x64xf32>
    %13 = arith.addf %10, %12 : vector<64x64xf32>
    %cst_12 = arith.constant 0.000000e+00 : f32
    %14 = vector.broadcast %cst_12 : f32 to vector<64x64xf32>
    %15 = arith.maximumf %13, %14 : vector<64x64xf32>
    %c0_13 = arith.constant 0 : index
    %c0_14 = arith.constant 0 : index
    %16 = vector.load %arg6[%c0_13, %c0_14] : memref<64x64xf32, #tpu.memory_space<vmem>>, vector<64x64xf32>
    tpu.vector_store %arg6[%c0_13, %c0_14], %15 {strides = array<i32>} : memref<64x64xf32, #tpu.memory_space<vmem>>, vector<64x64xf32>,
    return
  }
  func.func @transform_0(%arg0: i32) -> (i32, i32) {
    %c0_i32 = arith.constant 0 : i32
    %c0_i32_0 = arith.constant 0 : i32
    return %arg0, %c0_i32 : i32, i32
  }
  func.func @transform_1(%arg0: i32) -> (i32, i32) {
    %c0_i32 = arith.constant 0 : i32
    %c0_i32_0 = arith.constant 0 : i32
    %c0_i32_1 = arith.constant 0 : i32
    return %c0_i32, %c0_i32_0 : i32, i32
  }
  func.func @transform_2(%arg0: i32) -> (i32, i32) {
    %c0_i32 = arith.constant 0 : i32
    %c0_i32_0 = arith.constant 0 : i32
    return %arg0, %c0_i32 : i32, i32
  }
  func.func @transform_3(%arg0: i32) -> (i32, i32) {
    %c0_i32 = arith.constant 0 : i32
    %c0_i32_0 = arith.constant 0 : i32
    %c0_i32_1 = arith.constant 0 : i32
    return %c0_i32, %c0_i32_0 : i32, i32
  }
  func.func @transform_4(%arg0: i32) -> (i32, i32) {
    %c0_i32 = arith.constant 0 : i32
    %c0_i32_0 = arith.constant 0 : i32
    %c0_i32_1 = arith.constant 0 : i32
    return %c0_i32, %c0_i32_0 : i32, i32
  }
  func.func @transform_5(%arg0: i32) -> (i32, i32) {
    %c0_i32 = arith.constant 0 : i32
    %c0_i32_0 = arith.constant 0 : i32
    return %arg0, %c0_i32 : i32, i32
  }
}

</mosaic_0001>

<bundles_post_ra>
// kernel: tpu_custom_call.1
= control target key start
LH: loop header
LB: loop body
LE: loop exit
PB: predicated region body
PF: predicated region fallthrough
CT: control target
= control target key end

     0   :  { %s805_s18 = smov 0   ;;  %s929_s0 = inlined_call_operand.vmem [shape: f32[128,128], index: 0, kind: input, shape index: {}]   ;;  %s930_s1 = inlined_call_operand.vmem [shape: f32[128,32], index: 1, kind: input, shape index: {}]   ;;  %s931_s2 = inlined_call_operand.vmem [shape: f32[128,32], index: 2, kind: input, shape index: {}]   ;;  %s932_s3 = inlined_call_operand.vmem [shape: f32[32,64], index: 3, kind: input, shape index: {}]   ;;  %s933_s4 = inlined_call_operand.vmem [shape: f32[1,64], index: 4, kind: input, shape index: {}]   ;;  %s934_s5 = inlined_call_operand.vmem [shape: f32[128,64], index: 5, kind: output, shape index: {}]  }
   0x1 LB: > { %s637_s19 = sadd.s32 4294967295, %s773_s18   ;;  %p641_p0 = scmp.ge.s32.totalorder %s773_s18, 1  ;;  %s773_s18 = sphi %s805_s18, %s15_s18  }
   0x2   : > { %p199_p1 = scmp.lt.s32.totalorder %s773_s18, 3 }
   0x4   : > { %p200_p2 = pnand %p641_p0, %p199_p1 }
   0x5   : > { %s642_s28 = sshll.u32 (!%p200_p2), %s637_s19, 3 }
   0x6   : > { %203 = sbr.rel (%p200_p2) target bundleno = 456 (0x1c8), region = 40  ;;  %p233_p3 = scmp.lt.s32.totalorder (!%p200_p2), %s642_s28, 15 }
   0xb   : > { %v273_v0 = vld [vmem:[%s930_s1 + $0x78] sm:$0xff]  ;;  %v272_v1 = vld [vmem:[%s930_s1 + $0x70] sm:$0xff]  ;;  %v271_v2 = vld [vmem:[%s930_s1 + $0x68] sm:$0xff]  ;;  %s936_s28 = smov (!%p233_p3, %s642_s28), 15  ;;  %vm422_vm0 = vcmask 261120   ;;  %vm560_vm1 = vcmask 523264  }
   0xc   : > { %v289_v3 = vmax.f32 %v273_v0, 0.0  ;;  %v288_v4 = vmax.f32 %v272_v1, 0.0  ;;  %v270_v5 = vld [vmem:[%s930_s1 + $0x60] sm:$0xff]  ;;  %v287_v6 = vmax.f32 %v271_v2, 0.0  ;;  %v269_v7 = vld [vmem:[%s930_s1 + $0x58] sm:$0xff]  ;;  %v268_v10 = vld [vmem:[%s930_s1 + $0x50] sm:$0xff] }
   0xd   : > { %v286_v8 = vmax.f32 %v270_v5, 0.0  ;;  %v414_v9 = vld [vmem:[%s932_s3 + $0x18] sm:$0xff]  ;;  %v285_v11 = vmax.f32 %v269_v7, 0.0  ;;  %v267_v12 = vld [vmem:[%s930_s1 + $0x48] sm:$0xff]  ;;  %v284_v13 = vmax.f32 %v268_v10, 0.0  ;;  %s837_s12 = sshll.u32 %s936_s28, 3 }
   0xe   : > { %695 = vmatprep.subr.mxu0 %v289_v3  ;;  %739 = vmatprep.subr.mxu1 %v414_v9  ;;  %v266_v14 = vld [vmem:[%s930_s1 + $0x40] sm:$0xff]  ;;  %s846_s17 = scalar_lea.vmem %s929_s0, %s837_s12  ;;  %v283_v15 = vmax.f32 %v267_v12, 0.0  ;;  %v265_v17 = vld [vmem:[%s930_s1 + $0x38] sm:$0xff]  ;;  %v264_v19 = vld [vmem:[%s930_s1 + $0x30] sm:$0xff]  ;;  %s242_s20 = scalar_lea.vmem %s931_s2, %s837_s12 }
   0xf   : > { %696 = vmatpush3.msra.mxu0 %v289_v3  ;;  %740 = vmatpush3.msra.mxu1 %v414_v9  ;;  %v250_v16 = vld [vmem:[%s846_s17] sm:$0xff]  ;;  %v282_v18 = vmax.f32 %v266_v14, 0.0  ;;  %v281_v20 = vmax.f32 %v265_v17, 0.0  ;;  %v263_v21 = vld [vmem:[%s930_s1 + $0x28] sm:$0xff]  ;;  %v280_v22 = vmax.f32 %v264_v19, 0.0  ;;  %v261_v25 = vld [vmem:[%s930_s1 + $0x18] sm:$0xff]  ;;  %s908_s25 = scalar_lea.vmem %s934_s5, %s837_s12 }
  0x10   : > { %697 = vmatprep.subr.mxu0 %v288_v4  ;;  %727 = vmatprep.mubr.f32.mxu0 %v250_v16  ;;  %v262_v23 = vld [vmem:[%s930_s1 + $0x20] sm:$0xff]  ;;  %v279_v24 = vmax.f32 %v263_v21, 0.0  ;;  %v260_v27 = vld [vmem:[%s930_s1 + $0x10] sm:$0xff]  ;;  %v277_v28 = vmax.f32 %v261_v25, 0.0  ;;  %v259_v29 = vld [vmem:[%s930_s1 + $0x8] sm:$0xff] }
  0x11   : > { %698 = vmatpush3.msra.mxu0 %v288_v4  ;;  %v278_v26 = vmax.f32 %v262_v23, 0.0  ;;  %v276_v30 = vmax.f32 %v260_v27, 0.0  ;;  %v258_v31 = vld [vmem:[%s930_s1] sm:$0xff]  ;;  %v275_v32 = vmax.f32 %v259_v29, 0.0  ;;  %v251_v34 = vld [vmem:[%s846_s17 + $0x8] sm:$0xff]  ;;  %v252_v35 = vld [vmem:[%s846_s17 + $0x10] sm:$0xff] }
  0x12   : > { %699 = vmatprep.subr.mxu0 %v287_v6  ;;  %v274_v33 = vmax.f32 %v258_v31, 0.0  ;;  %v253_v36 = vld [vmem:[%s846_s17 + $0x18] sm:$0xff]  ;;  %v254_v37 = vld [vmem:[%s846_s17 + $0x20] sm:$0xff]  ;;  %v255_v38 = vld [vmem:[%s846_s17 + $0x28] sm:$0xff] }
  0x13   : > { %700 = vmatpush3.msra.mxu0 %v287_v6  ;;  %v256_v39 = vld [vmem:[%s846_s17 + $0x30] sm:$0xff]  ;;  %v257_v40 = vld [vmem:[%s846_s17 + $0x38] sm:$0xff]  ;;  %v412_v42 = vld [vmem:[%s932_s3 + $0x8] sm:$0xff] }
  0x14   : > { %701 = vmatprep.subr.mxu0 %v286_v8  ;;  %v413_v41 = vld [vmem:[%s932_s3 + $0x10] sm:$0xff]  ;;  %v411_v43 = vld [vmem:[%s932_s3] sm:$0xff]  ;;  %v396_v46 = vld [vmem:[%s242_s20 + $0x8] sm:$0xff] }
  0x15   : > { %702 = vmatpush3.msra.mxu0 %v286_v8  ;;  %741 = vmatprep.subr.mxu1 %v413_v41  ;;  %v395_v45 = vld [vmem:[%s242_s20] sm:$0xff]  ;;  %v397_v51 = vld [vmem:[%s242_s20 + $0x10] sm:$0xff]  ;;  %v398_v52 = vld [vmem:[%s242_s20 + $0x18] sm:$0xff] }
  0x16   : > { %703 = vmatprep.subr.mxu0 %v285_v11  ;;  %742 = vmatpush3.msra.mxu1 %v413_v41  ;;  %v399_v57 = vld [vmem:[%s242_s20 + $0x20] sm:$0xff]  ;;  %v400_v58 = vld [vmem:[%s242_s20 + $0x28] sm:$0xff]  ;;  %v401_v63 = vld [vmem:[%s242_s20 + $0x30] sm:$0xff] }
  0x17   : > { %704 = vmatpush3.msra.mxu0 %v285_v11  ;;  %743 = vmatprep.subr.mxu1 %v412_v42  ;;  %v402_v0 = vld [vmem:[%s242_s20 + $0x38] sm:$0xff]  ;;  %v648_v4 = vld [vmem:[%s933_s4] ss:$0 sm:$0xff] }
  0x18   : > { %705 = vmatprep.subr.mxu0 %v284_v13  ;;  %744 = vmatpush3.msra.mxu1 %v412_v42 }
  0x19   : > { %706 = vmatpush3.msra.mxu0 %v284_v13  ;;  %745 = vmatprep.subr.mxu1 %v411_v43 }
  0x1a   : > { %707 = vmatprep.subr.mxu0 %v283_v15  ;;  %746 = vmatpush3.msra.mxu1 %v411_v43 }
  0x1b   : > { %708 = vmatpush3.msra.mxu0 %v283_v15 }
  0x1c   : > { %709 = vmatprep.subr.mxu0 %v282_v18 }
  0x1d   : > { %710 = vmatpush3.msra.mxu0 %v282_v18 }
  0x1e   : > { %711 = vmatprep.subr.mxu0 %v281_v20 }
  0x1f   : > { %712 = vmatpush3.msra.mxu0 %v281_v20 }
  0x20   : > { %713 = vmatprep.subr.mxu0 %v280_v22 }
  0x21   : > { %714 = vmatpush3.msra.mxu0 %v280_v22 }
  0x22   : > { %715 = vmatprep.subr.mxu0 %v279_v24 }
  0x23   : > { %716 = vmatpush3.msra.mxu0 %v279_v24 }
  0x24   : > { %717 = vmatprep.subr.mxu0 %v278_v26 }
  0x25   : > { %718 = vmatpush3.msra.mxu0 %v278_v26 }
  0x26   : > { %719 = vmatprep.subr.mxu0 %v277_v28 }
  0x27   : > { %720 = vmatpush3.msra.mxu0 %v277_v28 }
  0x28   : > { %721 = vmatprep.subr.mxu0 %v276_v30 }
  0x29   : > { %722 = vmatpush3.msra.mxu0 %v276_v30 }
  0x2a   : > { %723 = vmatprep.subr.mxu0 %v275_v32 }
  0x2b   : > { %724 = vmatpush3.msra.mxu0 %v275_v32 }
  0x2c   : > { %725 = vmatprep.subr.mxu0 %v274_v33 }
  0x2d   : > { %726 = vmatpush3.msra.mxu0 %v274_v33 }
  0x2e   : > { %728 = vmatmul.mubr.f32.vlgmr.msra.gmra.mxu0 %v251_v34 }
  0x2f   : > { %730 = vmatprep.mubr.f32.mxu0 %v252_v35 }
  0x32   : > { %731 = vmatmul.mubr.f32.gmra.mxu0 %v253_v36 }
  0x33   : > { %733 = vmatprep.mubr.f32.mxu0 %v254_v37 }
  0x36   : > { %734 = vmatmul.mubr.f32.gmra.mxu0 %v255_v38 }
  0x37   : > { %736 = vmatprep.mubr.f32.mxu0 %v256_v39 }
  0x3a   : > { %737 = vmatmul.mubr.f32.gmra.mxu0 %v257_v40 }
  0xee   : > { %v729_v44 = vpop.f32.mrf.mxu0 }
  0xef   : > { %v404_v49 = vadd.f32 %v729_v44, %v396_v46 }
  0xf0   : > { %v356_v47 = vpop.f32.mrf.mxu0 }
  0xf1   : > { %v403_v48 = vadd.f32 %v395_v45, %v356_v47 }
  0xf2   : > { %v732_v50 = vpop.f32.mrf.mxu0 }
  0xf3   : > { %747 = vmatprep.mubr.msk.f32.mxu1 %vm422_vm0, %v403_v48  ;;  %v406_v55 = vadd.f32 %v732_v50, %v398_v52 }
  0xf4   : > { %v366_v53 = vpop.f32.mrf.mxu0  ;;  %748 = vmatmul.mubr.msk.f32.vlgmr.msra.gmra.mxu1 %vm422_vm0, %v404_v49 }
  0xf5   : > { %v405_v54 = vadd.f32 %v397_v51, %v366_v53 }
  0xf6   : > { %v735_v56 = vpop.f32.mrf.mxu0 }
  0xf7   : > { %750 = vmatprep.mubr.msk.f32.mxu1 %vm422_vm0, %v405_v54  ;;  %v408_v61 = vadd.f32 %v735_v56, %v400_v58 }
  0xf8   : > { %v376_v59 = vpop.f32.mrf.mxu0  ;;  %751 = vmatmul.mubr.msk.f32.gmra.mxu1 %vm422_vm0, %v406_v55 }
  0xf9   : > { %v407_v60 = vadd.f32 %v399_v57, %v376_v59 }
  0xfa   : > { %v738_v62 = vpop.f32.mrf.mxu0 }
  0xfb   : > { %753 = vmatprep.mubr.msk.f32.mxu1 %vm422_vm0, %v407_v60  ;;  %v410_v3 = vadd.f32 %v738_v62, %v402_v0 }
  0xfc   : > { %v386_v1 = vpop.f32.mrf.mxu0  ;;  %754 = vmatmul.mubr.msk.f32.gmra.mxu1 %vm422_vm0, %v408_v61 }
  0xfd   : > { %v409_v2 = vadd.f32 %v401_v63, %v386_v1 }
  0xff   : > { %756 = vmatprep.mubr.msk.f32.mxu1 %vm422_vm0, %v409_v2 }
 0x100   : > { %757 = vmatmul.mubr.msk.f32.gmra.mxu1 %vm422_vm0, %v410_v3 }
 0x1b4   : > { %v749_v5 = vpop.f32.mrf.mxu1 }
 0x1b5   : > { %v519_v6 = vadd.f32 %v749_v5, %v648_v4 }
 0x1b6   : > { %v513_v7 = vpop.f32.mrf.mxu1 }
 0x1b7   : > { %v553_v8 = vmax.f32 %v519_v6, 0.0  ;;  %v514_v9 = vadd.f32 %v648_v4, %v513_v7 }
 0x1b8   : > { %v752_v10 = vpop.f32.mrf.mxu1 }
 0x1b9   : > { %562 = vst.msk [vmem:[%s908_s25 + $0x8] sm:$0xff] %vm560_vm1, %v553_v8  ;;  %v552_v11 = vmax.f32 %v514_v9, 0.0  ;;  %v529_v12 = vadd.f32 %v752_v10, %v648_v4 }
 0x1ba   : > { %v523_v13 = vpop.f32.mrf.mxu1 }
 0x1bb   : > { %561 = vst.msk [vmem:[%s908_s25] sm:$0xff] %vm560_vm1, %v552_v11  ;;  %v555_v14 = vmax.f32 %v529_v12, 0.0  ;;  %v524_v15 = vadd.f32 %v648_v4, %v523_v13 }
 0x1bc   : > { %v755_v16 = vpop.f32.mrf.mxu1 }
 0x1bd   : > { %564 = vst.msk [vmem:[%s908_s25 + $0x18] sm:$0xff] %vm560_vm1, %v555_v14  ;;  %v554_v17 = vmax.f32 %v524_v15, 0.0  ;;  %v539_v18 = vadd.f32 %v755_v16, %v648_v4 }
 0x1be   : > { %v533_v19 = vpop.f32.mrf.mxu1 }
 0x1bf   : > { %563 = vst.msk [vmem:[%s908_s25 + $0x10] sm:$0xff] %vm560_vm1, %v554_v17  ;;  %v557_v20 = vmax.f32 %v539_v18, 0.0  ;;  %v534_v21 = vadd.f32 %v648_v4, %v533_v19 }
 0x1c0   : > { %v758_v22 = vpop.f32.mrf.mxu1 }
 0x1c1   : > { %566 = vst.msk [vmem:[%s908_s25 + $0x28] sm:$0xff] %vm560_vm1, %v557_v20  ;;  %v556_v23 = vmax.f32 %v534_v21, 0.0  ;;  %v549_v24 = vadd.f32 %v758_v22, %v648_v4 }
 0x1c2   : > { %v543_v25 = vpop.f32.mrf.mxu1 }
 0x1c3   : > { %565 = vst.msk [vmem:[%s908_s25 + $0x20] sm:$0xff] %vm560_vm1, %v556_v23  ;;  %v559_v26 = vmax.f32 %v549_v24, 0.0  ;;  %v544_v27 = vadd.f32 %v648_v4, %v543_v25 }
 0x1c5   : > { %568 = vst.msk [vmem:[%s908_s25 + $0x38] sm:$0xff] %vm560_vm1, %v559_v26  ;;  %v558_v28 = vmax.f32 %v544_v27, 0.0 }
 0x1c7   : > { %567 = vst.msk [vmem:[%s908_s25 + $0x30] sm:$0xff] %vm560_vm1, %v558_v28 }
 0x1c8 PF: > { %s15_s18 = sadd.s32 1, %s773_s18  }
 0x1c9   : > { %p12_p4 = scmp.ge.s32.totalorder %s15_s18, 4  }
 0x1cb   :  { %14 = sbr.rel (!%p12_p4) target bundleno = 1 (0x1), region = 73 }

</bundles_post_ra>
